<compile_context>
chip_gen: v6e
topology: v6e:2x2x1
jax: 0.10.0
libtpu: 0.0.40
codegen_flags: <defaults>
</compile_context>

<pallas_src>
import jax
import jax.numpy as jnp
from jax.experimental import pallas as pl
from jax.experimental.pallas import tpu as pltpu


def _rprelu_bias_kernel(x_ref, alpha_ref, bi_ref, bo_ref, o_ref):
    # x_ref / o_ref: (Tr, Thw) lane-dense tile; alpha/bi/bo: (Tr, 1) f32.
    x = x_ref[...].astype(jnp.float32)
    xb = x + bi_ref[...]                                   # LearnableBias (input)
    y = jnp.where(xb >= 0, xb, alpha_ref[...] * xb)        # per-channel PReLU
    o_ref[...] = (y + bo_ref[...]).astype(o_ref.dtype)     # LearnableBias (output)


def _rprelu_nobias_kernel(x_ref, alpha_ref, o_ref):
    x = x_ref[...].astype(jnp.float32)
    y = jnp.where(x >= 0, x, alpha_ref[...] * x)           # per-channel PReLU
    o_ref[...] = y.astype(o_ref.dtype)


def _pick_tiles(R, HW, itemsize):
    """Pick (Tr, Thw) row/spatial tile sizes for the flattened (R, HW) view.

    Thw: full HW when it fits (full-dim blocks are always layout-legal),
         otherwise 2048 (multiple of 128 -> lane-dense, unmasked stores).
    Tr:  full R when small, otherwise sublane-aligned and capped so one x tile
         is ~2 MiB (4 double-buffered in/out tiles stay well under every
         chip's default scoped-VMEM budget).
    """
    thw = HW if HW <= 4096 else 2048
    sublane = {4: 8, 2: 16, 1: 32}.get(itemsize, 8)
    target_bytes = 2 * 1024 * 1024
    max_tr = max(sublane, target_bytes // max(1, thw * itemsize))
    if R <= max_tr:
        tr = R
    else:
        tr = max(sublane, (max_tr // sublane) * sublane)
    return tr, thw


def rprelu(x_nchw, prelu_weight, inp_bias=None, out_bias=None, *, bias=False):
    """Forward pass of RPReLU.

    x_nchw:       (N, C, H, W)
    prelu_weight: (C,)  -- nn.PReLU(channels) weight
    inp_bias:     (C,)  -- LearnableBias weight (only used if bias=True)
    out_bias:     (C,)  -- LearnableBias weight (only used if bias=True)
    """
    N, C, H, W = x_nchw.shape
    HW = H * W
    R = N * C
    x = x_nchw.reshape(R, HW)                     # contiguous -> free reshape

    tr, thw = _pick_tiles(R, HW, jnp.dtype(x.dtype).itemsize)
    grid = (pl.cdiv(R, tr), pl.cdiv(HW, thw))

    def _row_param(p):
        # (C,) -> (N*C, 1) f32 so row r of the slab picks channel r % C.
        return jnp.tile(p.astype(jnp.float32).reshape(C), (N,)).reshape(R, 1)

    alpha = _row_param(prelu_weight)

    x_spec = pl.BlockSpec((tr, thw), lambda r, s: (r, s))
    p_spec = pl.BlockSpec((tr, 1), lambda r, s: (r, 0))

    if bias:
        bi = _row_param(inp_bias)
        bo = _row_param(out_bias)
        kernel = _rprelu_bias_kernel
        in_specs = [x_spec, p_spec, p_spec, p_spec]
        args = (x, alpha, bi, bo)
    else:
        kernel = _rprelu_nobias_kernel
        in_specs = [x_spec, p_spec]
        args = (x, alpha)

    out = pl.pallas_call(
        kernel,
        out_shape=jax.ShapeDtypeStruct((R, HW), x.dtype),
        grid_spec=pltpu.PrefetchScalarGridSpec(
            num_scalar_prefetch=0,
            grid=grid,
            in_specs=in_specs,
            out_specs=x_spec,
        ),
        compiler_params=pltpu.CompilerParams(
            dimension_semantics=("parallel", "parallel")),
    )(*args)

    return out.reshape(N, C, H, W)


def _reference(x, alpha, bi, bo, bias):
    # Pure-JAX reference matching the PyTorch forward (computed in f32).
    xf = x.astype(jnp.float32)
    a = alpha.astype(jnp.float32).reshape(1, -1, 1, 1)
    if bias:
        xf = xf + bi.astype(jnp.float32).reshape(1, -1, 1, 1)
    xf = jnp.where(xf >= 0, xf, a * xf)
    if bias:
        xf = xf + bo.astype(jnp.float32).reshape(1, -1, 1, 1)
    return xf.astype(x.dtype)


if __name__ == "__main__":
    key = jax.random.PRNGKey(0)
    kx, ka, kb1, kb2, kx2, kx3 = jax.random.split(key, 6)

    # --- primary small case: N=2, C=4, 16x16 (HW=256, lane-dense) -----------
    N, C, H, W = 2, 4, 16, 16
    x = jax.random.normal(kx, (N, C, H, W), dtype=jnp.float32)

    # nn.PReLU(channels) initializes weight to 0.25 per channel; LearnableBias
    # initializes to zero in PyTorch — use nonzero values to exercise the path.
    prelu_weight = jnp.full((C,), 0.25, dtype=jnp.float32)
    inp_bias = 0.1 * jax.random.normal(kb1, (C,), dtype=jnp.float32)
    out_bias = 0.1 * jax.random.normal(kb2, (C,), dtype=jnp.float32)

    y_bias = jax.block_until_ready(
        rprelu(x, prelu_weight, inp_bias, out_bias, bias=True))
    ref_bias = _reference(x, prelu_weight, inp_bias, out_bias, True)

    y_nobias = jax.block_until_ready(rprelu(x, prelu_weight, bias=False))
    ref_nobias = _reference(x, prelu_weight, inp_bias, out_bias, False)

    assert y_bias.shape == (N, C, H, W)
    assert jnp.allclose(y_bias, ref_bias, atol=1e-6, rtol=1e-6)
    assert jnp.allclose(y_nobias, ref_nobias, atol=1e-6, rtol=1e-6)

    # --- secondary case: non-128-multiple spatial dim (7x7), odd C ----------
    N2, C2, H2, W2 = 2, 3, 7, 7
    x2 = jax.random.normal(kx2, (N2, C2, H2, W2), dtype=jnp.float32)
    w2 = jnp.full((C2,), 0.25, dtype=jnp.float32)
    b2i = 0.05 * jnp.arange(C2, dtype=jnp.float32)
    b2o = -0.05 * jnp.arange(C2, dtype=jnp.float32)
    y2 = jax.block_until_ready(rprelu(x2, w2, b2i, b2o, bias=True))
    assert jnp.allclose(y2, _reference(x2, w2, b2i, b2o, True),
                        atol=1e-6, rtol=1e-6)

    # --- bf16 I/O case (compute in f32, cast back to bf16) ------------------
    x3 = jax.random.normal(kx3, (N, C, H, W), dtype=jnp.float32).astype(jnp.bfloat16)
    y3 = jax.block_until_ready(
        rprelu(x3, prelu_weight, inp_bias, out_bias, bias=True))
    ref3 = _reference(x3, prelu_weight, inp_bias, out_bias, True)
    assert y3.dtype == jnp.bfloat16
    assert jnp.allclose(y3.astype(jnp.float32), ref3.astype(jnp.float32),
                        atol=2e-2, rtol=2e-2)

    print("KERNEL_OK")
</pallas_src>

<mosaic_0001>
module attributes {stable_mosaic.version = 11 : i64} {
  func.func @_rprelu_bias_kernel(%arg0: i32, %arg1: i32, %arg2: memref<8x256xf32, #tpu.memory_space<vmem>>, %arg3: memref<8x1xf32, #tpu.memory_space<vmem>>, %arg4: memref<8x1xf32, #tpu.memory_space<vmem>>, %arg5: memref<8x1xf32, #tpu.memory_space<vmem>>, %arg6: memref<8x256xf32, #tpu.memory_space<vmem>>) attributes {dimension_semantics = [#tpu.dimension_semantics<parallel>, #tpu.dimension_semantics<parallel>], iteration_bounds = array<i64: 1, 1>, scalar_prefetch = 0 : i64, scratch_operands = 0 : i64, tpu.core_type = #tpu.core_type<tc>, window_params = [{transform_indices = @transform_0, window_bounds = array<i64: 8, 256>}, {transform_indices = @transform_1, window_bounds = array<i64: 8, 1>}, {transform_indices = @transform_2, window_bounds = array<i64: 8, 1>}, {transform_indices = @transform_3, window_bounds = array<i64: 8, 1>}, {transform_indices = @transform_4, window_bounds = array<i64: 8, 256>}]} {
    %c0 = arith.constant 0 : index
    %c0_0 = arith.constant 0 : index
    %0 = vector.load %arg2[%c0, %c0_0] : memref<8x256xf32, #tpu.memory_space<vmem>>, vector<8x256xf32>
    %c0_1 = arith.constant 0 : index
    %c0_2 = arith.constant 0 : index
    %1 = vector.load %arg4[%c0_1, %c0_2] : memref<8x1xf32, #tpu.memory_space<vmem>>, vector<8x1xf32>
    %2 = vector.broadcast %1 : vector<8x1xf32> to vector<8x256xf32>
    %3 = arith.addf %0, %2 : vector<8x256xf32>
    %cst = arith.constant 0.000000e+00 : f32
    %4 = vector.broadcast %cst : f32 to vector<8x256xf32>
    %5 = arith.cmpf oge, %3, %4 : vector<8x256xf32>
    %c0_3 = arith.constant 0 : index
    %c0_4 = arith.constant 0 : index
    %6 = vector.load %arg3[%c0_3, %c0_4] : memref<8x1xf32, #tpu.memory_space<vmem>>, vector<8x1xf32>
    %7 = vector.broadcast %6 : vector<8x1xf32> to vector<8x256xf32>
    %8 = arith.mulf %7, %3 : vector<8x256xf32>
    %9 = arith.select %5, %3, %8 : vector<8x256xi1>, vector<8x256xf32>
    %c0_5 = arith.constant 0 : index
    %c0_6 = arith.constant 0 : index
    %10 = vector.load %arg5[%c0_5, %c0_6] : memref<8x1xf32, #tpu.memory_space<vmem>>, vector<8x1xf32>
    %11 = vector.broadcast %10 : vector<8x1xf32> to vector<8x256xf32>
    %12 = arith.addf %9, %11 : vector<8x256xf32>
    %c0_7 = arith.constant 0 : index
    %c0_8 = arith.constant 0 : index
    %13 = vector.load %arg6[%c0_7, %c0_8] : memref<8x256xf32, #tpu.memory_space<vmem>>, vector<8x256xf32>
    tpu.vector_store %arg6[%c0_7, %c0_8], %12 {strides = array<i32>} : memref<8x256xf32, #tpu.memory_space<vmem>>, vector<8x256xf32>,
    return
  }
  func.func @transform_0(%arg0: i32, %arg1: i32) -> (i32, i32) {
    %c0_i32 = arith.constant 0 : i32
    return %arg0, %arg1 : i32, i32
  }
  func.func @transform_1(%arg0: i32, %arg1: i32) -> (i32, i32) {
    %c0_i32 = arith.constant 0 : i32
    %c0_i32_0 = arith.constant 0 : i32
    return %arg0, %c0_i32 : i32, i32
  }
  func.func @transform_2(%arg0: i32, %arg1: i32) -> (i32, i32) {
    %c0_i32 = arith.constant 0 : i32
    %c0_i32_0 = arith.constant 0 : i32
    return %arg0, %c0_i32 : i32, i32
  }
  func.func @transform_3(%arg0: i32, %arg1: i32) -> (i32, i32) {
    %c0_i32 = arith.constant 0 : i32
    %c0_i32_0 = arith.constant 0 : i32
    return %arg0, %c0_i32 : i32, i32
  }
  func.func @transform_4(%arg0: i32, %arg1: i32) -> (i32, i32) {
    %c0_i32 = arith.constant 0 : i32
    return %arg0, %arg1 : i32, i32
  }
}

</mosaic_0001>

<bundles_post_ra>
// kernel: tpu_custom_call.1
= control target key start
LH: loop header
LB: loop body
LE: loop exit
PB: predicated region body
PF: predicated region fallthrough
CT: control target
= control target key end

     0   :  { %v90_v2 = vmov 0   ;;  %s135_s0 = inlined_call_operand.vmem [shape: f32[8,256], index: 0, kind: input, shape index: {}]   ;;  %s136_s1 = inlined_call_operand.vmem [shape: f32[8,1], index: 1, kind: input, shape index: {}]   ;;  %s137_s2 = inlined_call_operand.vmem [shape: f32[8,1], index: 2, kind: input, shape index: {}]   ;;  %s138_s3 = inlined_call_operand.vmem [shape: f32[8,1], index: 3, kind: input, shape index: {}]   ;;  %s139_s4 = inlined_call_operand.hbm [shape: f32[8,256], index: 4, kind: output, shape index: {}]  }
   0x1   :  { %v20_v0 = vld [vmem:[%s137_s2] sm:$0xff]  ;;  %66 = vset.pattern.permute.xlu0 %v90_v2  ;;  %67 = vset.pattern.permute.xlu1 %v90_v2 }
   0x2   :  { %v40_v1 = vld [vmem:[%s138_s3] sm:$0xff] }
   0x3   :  { %9 = vsyncpa [#allocation3], 0  ;;  %23 = vperm.xlu0 %66, %v20_v0   ;;  %43 = vperm.xlu1 %67, %v40_v1   ;;  %v30_v3 = vld [vmem:[%s136_s1] sm:$0xff]  ;;  %v19_v5 = vld [vmem:[%s135_s0 + $0x8] sm:$0xff]  ;;  %s91_s3 = smov [#allocation2]  }
   0x4   :  { %v18_v4 = vld [vmem:[%s135_s0] sm:$0xff]  ;;  %s56_s24 = sshll.u32 %s91_s3, 4  ;;  %s57_s24 = int_to_ptr.vmem [resolvable:$true] %s56_s24 }
   0x5   :  { %s68_s1 = scalar_lea.vmem %s57_s24, 256  ;;  %p73_p1 = scmp.lt.s32.totalorder %s57_s24, %s57_s24 }
   0x6   :  { %p69_p0 = scmp.ne.s32.totalorder %s57_s24, %s68_s1  ;;  %p74_p2 = scmp.lt.s32.totalorder %s68_s1, %s68_s1 }
   0x7   :  { %33 = vperm.xlu0 %66, %v30_v3  }
   0x8   :  { %p75_p3 = por %p74_p2, %p73_p1 }
   0xa   :  { %p76_p4 = pnand %p75_p3, %p69_p0 }
  0x7e   :  { %v24_v6 = vpop.permute.xlu0 %23  ;;  %v44_v12 = vpop.permute.xlu1 %43 }
  0x7f   :  { %v26_v7 = vadd.f32 %v24_v6, %v18_v4  ;;  %v27_v8 = vadd.f32 %v24_v6, %v19_v5 }
  0x81   :  { %vm28_vm0 = vcmp.ge.f32.partialorder %v26_v7, 0.0  ;;  %vm29_vm1 = vcmp.ge.f32.partialorder %v27_v8, 0.0 }
  0x82   :  { %v34_v9 = vpop.permute.xlu0 %33 }
  0x83   :  { %v36_v10 = vmul.f32 %v34_v9, %v26_v7  ;;  %v37_v11 = vmul.f32 %v34_v9, %v27_v8 }
  0x85   :  { %v38_v13 = vsel %vm28_vm0, %v26_v7, %v36_v10  ;;  %v39_v14 = vsel %vm29_vm1, %v27_v8, %v37_v11 }
  0x86   :  { %v46_v15 = vadd.f32 %v44_v12, %v38_v13  ;;  %v47_v16 = vadd.f32 %v44_v12, %v39_v14 }
  0x88   :  { %48 = vst [vmem:[#allocation2] sm:$0xff] %v46_v15  ;;  %49 = vst [vmem:[#allocation2 + $0x8] sm:$0xff] %v47_v16 }
  0x89   :  { %79 = shalt.err (!%p76_p4)
}
  0x8a   :  { %59 = dma.vmem_to_hbm [thread:$0]  %s57_s24, 256, %s139_s4, [#allocation3]  }
  0x8b   :  { %88 = dma.done.wait [#allocation3], 256  }
  0x8c   :  { %89 = vsyncadd [#allocation3], 4294967040 }
  0x8d   :  { %63 = vsyncpa [#allocation3], 1 }

</bundles_post_ra>
